<compile_context>
chip_gen: v7x
topology: tpu7x:2x2x1
jax: 0.10.0
libtpu: 0.0.40
codegen_flags: <defaults>
</compile_context>

<pallas_src>
import functools

import jax
import jax.numpy as jnp
from jax import lax
from jax.experimental import pallas as pl
from jax.experimental.pallas import tpu as pltpu


def _round_up(x, m):
    return (x + m - 1) // m * m


def fused_embed_rnn_linear_kernel(ids_ref, emb_proj_ref, whh_ref, wlin_ref,
                                  blin_ref, o_ref, xp_ref, h_ref,
                                  *, batch, seq_len):
    """Fused gather + input-projection + tanh-RNN recurrence + final Linear.

    ids_ref:      (L*B, 1)  int32 token ids, time-major (row t*B + b)
    emb_proj_ref: (Vp, Hp)  f32   emb_table @ W_ih^T + (b_ih + b_hh), zero-padded
    whh_ref:      (Hp, Hp)  bf16  W_hh^T, zero-padded
    wlin_ref:     (Hp, S)   bf16  W_lin^T, zero-padded rows
    blin_ref:     (1, S)    f32   b_lin
    o_ref:        (B, S)    f32   output logits
    xp_ref:       (L*B, Hp) f32   VMEM scratch: hoisted input projection
    h_ref:        (B, Hp)   f32   VMEM scratch: hidden state
    """
    LB = xp_ref.shape[0]
    Vp = emb_proj_ref.shape[0]

    # ---- Fused embedding gather + input projection: one lane-dense MXU pass ----
    # xp[i] = emb[x_i] @ W_ih^T + b_ih + b_hh  (exact: one-hot selects a single row)
    ids = ids_ref[...]                                         # (L*B, 1)
    iota = lax.broadcasted_iota(jnp.int32, (LB, Vp), 1)        # (L*B, Vp)
    one_hot = (iota == ids).astype(jnp.float32)                # (L*B, Vp)
    xp_ref[...] = jnp.dot(one_hot, emb_proj_ref[...],
                          preferred_element_type=jnp.float32)  # (L*B, Hp)

    # ---- Serial tanh recurrence (only h @ W_hh^T left on the critical chain) ----
    h_ref[...] = jnp.zeros_like(h_ref)                         # h0 = 0 (PyTorch default)

    def step(t, carry):
        base = pl.multiple_of(t * batch, batch)                # sublane-aligned start
        x_t = xp_ref[pl.ds(base, batch), :]                    # (B, Hp) f32
        hh = jnp.dot(h_ref[...].astype(jnp.bfloat16), whh_ref[...],
                     preferred_element_type=jnp.float32)       # (B, Hp) f32
        h_ref[...] = jnp.tanh(x_t + hh)                        # f32 elementwise (v5e-safe)
        return carry

    # L is tiny here; for L >~ 32 switch to partial unrolling (e.g. unroll=8)
    # to avoid vreg spills inside the serial chain.
    lax.fori_loop(0, seq_len, step, 0, unroll=True)

    # ---- Final Linear: y = h_n @ W_lin^T + b_lin (single masked store, S < 128) ----
    o_ref[...] = (jnp.dot(h_ref[...].astype(jnp.bfloat16), wlin_ref[...],
                          preferred_element_type=jnp.float32)
                  + blin_ref[...])


def my_nlp_model_forward(x_ids, params):
    """x_ids: (B, L) int32 token ids. Returns logits (B, L)."""
    emb_table = params["emb"]          # (V, D), row 0 zero (padding_idx=0)
    W_ih = params["W_ih"]              # (H, D)
    W_hh = params["W_hh"]              # (H, H)
    b_ih = params["b_ih"]              # (H,)
    b_hh = params["b_hh"]              # (H,)
    W_lin = params["W_lin"]            # (S, H)
    b_lin = params["b_lin"]            # (S,)

    B, L = x_ids.shape
    V, _D = emb_table.shape
    H = W_ih.shape[0]
    S = W_lin.shape[0]
    Hp = _round_up(H, 128)             # lane-dense hidden dim
    Vp = _round_up(V, 128)             # lane-dense one-hot width

    # --- one-time weight folding / padding (constant-folds under jit) ---
    emb_proj = emb_table @ W_ih.T + (b_ih + b_hh)[None, :]            # (V, H)
    emb_proj_p = jnp.zeros((Vp, Hp), jnp.float32).at[:V, :H].set(emb_proj)
    whh_p = jnp.zeros((Hp, Hp), jnp.float32).at[:H, :H].set(W_hh.T)
    whh_p = whh_p.astype(jnp.bfloat16)
    wlin_p = jnp.zeros((Hp, S), jnp.float32).at[:H, :].set(W_lin.T)
    wlin_p = wlin_p.astype(jnp.bfloat16)
    blin = b_lin.reshape(1, S).astype(jnp.float32)

    # token ids, time-major flattened (row = t*B + b); tiny (B,L) int transpose only.
    ids_tm = x_ids.T.reshape(L * B, 1).astype(jnp.int32)

    vmem = pl.BlockSpec(memory_space=pltpu.MemorySpace.VMEM)
    kernel = functools.partial(fused_embed_rnn_linear_kernel, batch=B, seq_len=L)

    # TODO(synk): for large B on v7x, add a leading batch grid axis with
    # dimension_semantics=("parallel",) to use both TensorCores; for large L,
    # pipeline xp over time chunks with BlockSpecs instead of one whole-VMEM slab.
    return pl.pallas_call(
        kernel,
        out_shape=jax.ShapeDtypeStruct((B, S), jnp.float32),
        in_specs=[vmem] * 5,
        out_specs=vmem,
        scratch_shapes=[pltpu.VMEM((L * B, Hp), jnp.float32),   # hoisted xp
                        pltpu.VMEM((B, Hp), jnp.float32)],      # hidden state
    )(ids_tm, emb_proj_p, whh_p, wlin_p, blin)


def reference_forward(x_ids, params):
    """Pure-JAX fp32 reference matching PyTorch semantics."""
    emb = jnp.take(params["emb"], x_ids, axis=0)      # (B, L, D)
    B, L, _D = emb.shape
    H = params["W_ih"].shape[0]
    h = jnp.zeros((B, H), jnp.float32)
    for t in range(L):
        h = jnp.tanh(emb[:, t, :] @ params["W_ih"].T + params["b_ih"]
                     + h @ params["W_hh"].T + params["b_hh"])
    return h @ params["W_lin"].T + params["b_lin"]


def init_params(key, vocab_size, vector_dim, sentence_length):
    D = vector_dim
    H = 2 * vector_dim
    S = sentence_length
    ks = jax.random.split(key, 7)
    emb = jax.random.normal(ks[0], (vocab_size, D), jnp.float32)
    emb = emb.at[0].set(0.0)  # padding_idx=0
    k_rnn = 1.0 / jnp.sqrt(H)
    W_ih = jax.random.uniform(ks[1], (H, D), jnp.float32, -k_rnn, k_rnn)
    W_hh = jax.random.uniform(ks[2], (H, H), jnp.float32, -k_rnn, k_rnn)
    b_ih = jax.random.uniform(ks[3], (H,), jnp.float32, -k_rnn, k_rnn)
    b_hh = jax.random.uniform(ks[4], (H,), jnp.float32, -k_rnn, k_rnn)
    k_lin = 1.0 / jnp.sqrt(H)
    W_lin = jax.random.uniform(ks[5], (S, H), jnp.float32, -k_lin, k_lin)
    b_lin = jax.random.uniform(ks[6], (S,), jnp.float32, -k_lin, k_lin)
    return {"emb": emb, "W_ih": W_ih, "W_hh": W_hh, "b_ih": b_ih,
            "b_hh": b_hh, "W_lin": W_lin, "b_lin": b_lin}


if __name__ == "__main__":
    # Small shapes consistent with the module.
    VOCAB = 30
    VECTOR_DIM = 32          # D  (hidden H = 2*D = 64, padded to 128 in-kernel)
    SENTENCE_LEN = 8         # L (also output size of the Linear)
    BATCH = 8

    key = jax.random.PRNGKey(0)
    pkey, xkey = jax.random.split(key)
    params = init_params(pkey, VOCAB, VECTOR_DIM, SENTENCE_LEN)

    x_ids = jax.random.randint(xkey, (BATCH, SENTENCE_LEN), 0, VOCAB,
                               dtype=jnp.int32)

    fwd = jax.jit(my_nlp_model_forward)
    y_pred = fwd(x_ids, params)
    y_pred = jax.block_until_ready(y_pred)

    y_ref = reference_forward(x_ids, params)
    assert y_pred.shape == (BATCH, SENTENCE_LEN)
    # bf16 MXU operands for the recurrent/output weights -> loosened tolerance vs fp32 ref.
    assert jnp.allclose(y_pred, y_ref, atol=3e-2, rtol=3e-2), "mismatch vs reference"

    # TODO(synk): the y-is-not-None branch (cross_entropy loss) is training-only glue and
    # is not implemented as a kernel; only the inference path (y_pred) is kernelized.
    print("KERNEL_OK")
</pallas_src>

<mosaic_0001>
module attributes {stable_mosaic.version = 11 : i64} {
  func.func @fused_embed_rnn_linear_kernel(%arg0: memref<64x1xi32, #tpu.memory_space<vmem>>, %arg1: memref<128x128xf32, #tpu.memory_space<vmem>>, %arg2: memref<128x128xbf16, #tpu.memory_space<vmem>>, %arg3: memref<128x8xbf16, #tpu.memory_space<vmem>>, %arg4: memref<1x8xf32, #tpu.memory_space<vmem>>, %arg5: memref<8x8xf32, #tpu.memory_space<vmem>>, %arg6: memref<64x128xf32, #tpu.memory_space<vmem>>, %arg7: memref<8x128xf32, #tpu.memory_space<vmem>>) attributes {dimension_semantics = [], scalar_prefetch = 0 : i64, scratch_operands = 2 : i64, tpu.core_type = #tpu.core_type<tc>} {
    %c0 = arith.constant 0 : index
    %c0_0 = arith.constant 0 : index
    %0 = vector.load %arg0[%c0, %c0_0] : memref<64x1xi32, #tpu.memory_space<vmem>>, vector<64x1xi32>
    %1 = tpu.iota {dimensions = array<i32: 1>} : vector<64x128xi32>
    %2 = vector.broadcast %0 : vector<64x1xi32> to vector<64x128xi32>
    %3 = arith.cmpi eq, %1, %2 : vector<64x128xi32>
    %4 = arith.extui %3 : vector<64x128xi1> to vector<64x128xi32>
    %5 = arith.sitofp %4 : vector<64x128xi32> to vector<64x128xf32>
    %c0_1 = arith.constant 0 : index
    %c0_2 = arith.constant 0 : index
    %6 = vector.load %arg1[%c0_1, %c0_2] : memref<128x128xf32, #tpu.memory_space<vmem>>, vector<128x128xf32>
    %cst = arith.constant dense<0.000000e+00> : vector<64x128xf32>
    %7 = tpu.matmul %5, %6, %cst {dimension_numbers = #tpu.dot_dimension_numbers<[1], [0], [0], [1], [0, 0, 1, 1], [], []>} : vector<64x128xf32>, vector<128x128xf32>, vector<64x128xf32> -> vector<64x128xf32>
    %c0_3 = arith.constant 0 : index
    %c0_4 = arith.constant 0 : index
    %8 = vector.load %arg6[%c0_3, %c0_4] : memref<64x128xf32, #tpu.memory_space<vmem>>, vector<64x128xf32>
    tpu.vector_store %arg6[%c0_3, %c0_4], %7 {strides = array<i32>} : memref<64x128xf32, #tpu.memory_space<vmem>>, vector<64x128xf32>,
    %cst_5 = arith.constant 0.000000e+00 : f32
    %9 = vector.broadcast %cst_5 : f32 to vector<8x128xf32>
    %c0_6 = arith.constant 0 : index
    %c0_7 = arith.constant 0 : index
    %10 = vector.load %arg7[%c0_6, %c0_7] : memref<8x128xf32, #tpu.memory_space<vmem>>, vector<8x128xf32>
    tpu.vector_store %arg7[%c0_6, %c0_7], %9 {strides = array<i32>} : memref<8x128xf32, #tpu.memory_space<vmem>>, vector<8x128xf32>,
    %c0_i32 = arith.constant 0 : i32
    %c8_i32 = arith.constant 8 : i32
    %11 = arith.muli %c0_i32, %c8_i32 : i32
    %12 = tpu.assume_multiple %11, 8 : i32
    %13 = arith.index_cast %12 : i32 to index
    %c0_8 = arith.constant 0 : index
    %14 = vector.load %arg6[%13, %c0_8] : memref<64x128xf32, #tpu.memory_space<vmem>>, vector<8x128xf32>
    %c0_9 = arith.constant 0 : index
    %c0_10 = arith.constant 0 : index
    %15 = vector.load %arg7[%c0_9, %c0_10] : memref<8x128xf32, #tpu.memory_space<vmem>>, vector<8x128xf32>
    %16 = arith.truncf %15 : vector<8x128xf32> to vector<8x128xbf16>
    %c0_11 = arith.constant 0 : index
    %c0_12 = arith.constant 0 : index
    %17 = vector.load %arg2[%c0_11, %c0_12] : memref<128x128xbf16, #tpu.memory_space<vmem>>, vector<128x128xbf16>
    %cst_13 = arith.constant dense<0.000000e+00> : vector<8x128xf32>
    %18 = tpu.matmul %16, %17, %cst_13 {dimension_numbers = #tpu.dot_dimension_numbers<[1], [0], [0], [1], [0, 0, 1, 1], [], []>} : vector<8x128xbf16>, vector<128x128xbf16>, vector<8x128xf32> -> vector<8x128xf32>
    %19 = arith.addf %14, %18 : vector<8x128xf32>
    %20 = math.tanh %19 : vector<8x128xf32>
    %c0_14 = arith.constant 0 : index
    %c0_15 = arith.constant 0 : index
    %21 = vector.load %arg7[%c0_14, %c0_15] : memref<8x128xf32, #tpu.memory_space<vmem>>, vector<8x128xf32>
    tpu.vector_store %arg7[%c0_14, %c0_15], %20 {strides = array<i32>} : memref<8x128xf32, #tpu.memory_space<vmem>>, vector<8x128xf32>,
    %c1_i32 = arith.constant 1 : i32
    %c8_i32_16 = arith.constant 8 : i32
    %22 = arith.muli %c1_i32, %c8_i32_16 : i32
    %23 = tpu.assume_multiple %22, 8 : i32
    %24 = arith.index_cast %23 : i32 to index
    %c0_17 = arith.constant 0 : index
    %25 = vector.load %arg6[%24, %c0_17] : memref<64x128xf32, #tpu.memory_space<vmem>>, vector<8x128xf32>
    %c0_18 = arith.constant 0 : index
    %c0_19 = arith.constant 0 : index
    %26 = vector.load %arg7[%c0_18, %c0_19] : memref<8x128xf32, #tpu.memory_space<vmem>>, vector<8x128xf32>
    %27 = arith.truncf %26 : vector<8x128xf32> to vector<8x128xbf16>
    %c0_20 = arith.constant 0 : index
    %c0_21 = arith.constant 0 : index
    %28 = vector.load %arg2[%c0_20, %c0_21] : memref<128x128xbf16, #tpu.memory_space<vmem>>, vector<128x128xbf16>
    %cst_22 = arith.constant dense<0.000000e+00> : vector<8x128xf32>
    %29 = tpu.matmul %27, %28, %cst_22 {dimension_numbers = #tpu.dot_dimension_numbers<[1], [0], [0], [1], [0, 0, 1, 1], [], []>} : vector<8x128xbf16>, vector<128x128xbf16>, vector<8x128xf32> -> vector<8x128xf32>
    %30 = arith.addf %25, %29 : vector<8x128xf32>
    %31 = math.tanh %30 : vector<8x128xf32>
    %c0_23 = arith.constant 0 : index
    %c0_24 = arith.constant 0 : index
    %32 = vector.load %arg7[%c0_23, %c0_24] : memref<8x128xf32, #tpu.memory_space<vmem>>, vector<8x128xf32>
    tpu.vector_store %arg7[%c0_23, %c0_24], %31 {strides = array<i32>} : memref<8x128xf32, #tpu.memory_space<vmem>>, vector<8x128xf32>,
    %c2_i32 = arith.constant 2 : i32
    %c8_i32_25 = arith.constant 8 : i32
    %33 = arith.muli %c2_i32, %c8_i32_25 : i32
    %34 = tpu.assume_multiple %33, 8 : i32
    %35 = arith.index_cast %34 : i32 to index
    %c0_26 = arith.constant 0 : index
    %36 = vector.load %arg6[%35, %c0_26] : memref<64x128xf32, #tpu.memory_space<vmem>>, vector<8x128xf32>
    %c0_27 = arith.constant 0 : index
    %c0_28 = arith.constant 0 : index
    %37 = vector.load %arg7[%c0_27, %c0_28] : memref<8x128xf32, #tpu.memory_space<vmem>>, vector<8x128xf32>
    %38 = arith.truncf %37 : vector<8x128xf32> to vector<8x128xbf16>
    %c0_29 = arith.constant 0 : index
    %c0_30 = arith.constant 0 : index
    %39 = vector.load %arg2[%c0_29, %c0_30] : memref<128x128xbf16, #tpu.memory_space<vmem>>, vector<128x128xbf16>
    %cst_31 = arith.constant dense<0.000000e+00> : vector<8x128xf32>
    %40 = tpu.matmul %38, %39, %cst_31 {dimension_numbers = #tpu.dot_dimension_numbers<[1], [0], [0], [1], [0, 0, 1, 1], [], []>} : vector<8x128xbf16>, vector<128x128xbf16>, vector<8x128xf32> -> vector<8x128xf32>
    %41 = arith.addf %36, %40 : vector<8x128xf32>
    %42 = math.tanh %41 : vector<8x128xf32>
    %c0_32 = arith.constant 0 : index
    %c0_33 = arith.constant 0 : index
    %43 = vector.load %arg7[%c0_32, %c0_33] : memref<8x128xf32, #tpu.memory_space<vmem>>, vector<8x128xf32>
    tpu.vector_store %arg7[%c0_32, %c0_33], %42 {strides = array<i32>} : memref<8x128xf32, #tpu.memory_space<vmem>>, vector<8x128xf32>,
    %c3_i32 = arith.constant 3 : i32
    %c8_i32_34 = arith.constant 8 : i32
    %44 = arith.muli %c3_i32, %c8_i32_34 : i32
    %45 = tpu.assume_multiple %44, 8 : i32
    %46 = arith.index_cast %45 : i32 to index
    %c0_35 = arith.constant 0 : index
    %47 = vector.load %arg6[%46, %c0_35] : memref<64x128xf32, #tpu.memory_space<vmem>>, vector<8x128xf32>
    %c0_36 = arith.constant 0 : index
    %c0_37 = arith.constant 0 : index
    %48 = vector.load %arg7[%c0_36, %c0_37] : memref<8x128xf32, #tpu.memory_space<vmem>>, vector<8x128xf32>
    %49 = arith.truncf %48 : vector<8x128xf32> to vector<8x128xbf16>
    %c0_38 = arith.constant 0 : index
    %c0_39 = arith.constant 0 : index
    %50 = vector.load %arg2[%c0_38, %c0_39] : memref<128x128xbf16, #tpu.memory_space<vmem>>, vector<128x128xbf16>
    %cst_40 = arith.constant dense<0.000000e+00> : vector<8x128xf32>
    %51 = tpu.matmul %49, %50, %cst_40 {dimension_numbers = #tpu.dot_dimension_numbers<[1], [0], [0], [1], [0, 0, 1, 1], [], []>} : vector<8x128xbf16>, vector<128x128xbf16>, vector<8x128xf32> -> vector<8x128xf32>
    %52 = arith.addf %47, %51 : vector<8x128xf32>
    %53 = math.tanh %52 : vector<8x128xf32>
    %c0_41 = arith.constant 0 : index
    %c0_42 = arith.constant 0 : index
    %54 = vector.load %arg7[%c0_41, %c0_42] : memref<8x128xf32, #tpu.memory_space<vmem>>, vector<8x128xf32>
    tpu.vector_store %arg7[%c0_41, %c0_42], %53 {strides = array<i32>} : memref<8x128xf32, #tpu.memory_space<vmem>>, vector<8x128xf32>,
    %c4_i32 = arith.constant 4 : i32
    %c8_i32_43 = arith.constant 8 : i32
    %55 = arith.muli %c4_i32, %c8_i32_43 : i32
    %56 = tpu.assume_multiple %55, 8 : i32
    %57 = arith.index_cast %56 : i32 to index
    %c0_44 = arith.constant 0 : index
    %58 = vector.load %arg6[%57, %c0_44] : memref<64x128xf32, #tpu.memory_space<vmem>>, vector<8x128xf32>
    %c0_45 = arith.constant 0 : index
    %c0_46 = arith.constant 0 : index
    %59 = vector.load %arg7[%c0_45, %c0_46] : memref<8x128xf32, #tpu.memory_space<vmem>>, vector<8x128xf32>
    %60 = arith.truncf %59 : vector<8x128xf32> to vector<8x128xbf16>
    %c0_47 = arith.constant 0 : index
    %c0_48 = arith.constant 0 : index
    %61 = vector.load %arg2[%c0_47, %c0_48] : memref<128x128xbf16, #tpu.memory_space<vmem>>, vector<128x128xbf16>
    %cst_49 = arith.constant dense<0.000000e+00> : vector<8x128xf32>
    %62 = tpu.matmul %60, %61, %cst_49 {dimension_numbers = #tpu.dot_dimension_numbers<[1], [0], [0], [1], [0, 0, 1, 1], [], []>} : vector<8x128xbf16>, vector<128x128xbf16>, vector<8x128xf32> -> vector<8x128xf32>
    %63 = arith.addf %58, %62 : vector<8x128xf32>
    %64 = math.tanh %63 : vector<8x128xf32>
    %c0_50 = arith.constant 0 : index
    %c0_51 = arith.constant 0 : index
    %65 = vector.load %arg7[%c0_50, %c0_51] : memref<8x128xf32, #tpu.memory_space<vmem>>, vector<8x128xf32>
    tpu.vector_store %arg7[%c0_50, %c0_51], %64 {strides = array<i32>} : memref<8x128xf32, #tpu.memory_space<vmem>>, vector<8x128xf32>,
    %c5_i32 = arith.constant 5 : i32
    %c8_i32_52 = arith.constant 8 : i32
    %66 = arith.muli %c5_i32, %c8_i32_52 : i32
    %67 = tpu.assume_multiple %66, 8 : i32
    %68 = arith.index_cast %67 : i32 to index
    %c0_53 = arith.constant 0 : index
    %69 = vector.load %arg6[%68, %c0_53] : memref<64x128xf32, #tpu.memory_space<vmem>>, vector<8x128xf32>
    %c0_54 = arith.constant 0 : index
    %c0_55 = arith.constant 0 : index
    %70 = vector.load %arg7[%c0_54, %c0_55] : memref<8x128xf32, #tpu.memory_space<vmem>>, vector<8x128xf32>
    %71 = arith.truncf %70 : vector<8x128xf32> to vector<8x128xbf16>
    %c0_56 = arith.constant 0 : index
    %c0_57 = arith.constant 0 : index
    %72 = vector.load %arg2[%c0_56, %c0_57] : memref<128x128xbf16, #tpu.memory_space<vmem>>, vector<128x128xbf16>
    %cst_58 = arith.constant dense<0.000000e+00> : vector<8x128xf32>
    %73 = tpu.matmul %71, %72, %cst_58 {dimension_numbers = #tpu.dot_dimension_numbers<[1], [0], [0], [1], [0, 0, 1, 1], [], []>} : vector<8x128xbf16>, vector<128x128xbf16>, vector<8x128xf32> -> vector<8x128xf32>
    %74 = arith.addf %69, %73 : vector<8x128xf32>
    %75 = math.tanh %74 : vector<8x128xf32>
    %c0_59 = arith.constant 0 : index
    %c0_60 = arith.constant 0 : index
    %76 = vector.load %arg7[%c0_59, %c0_60] : memref<8x128xf32, #tpu.memory_space<vmem>>, vector<8x128xf32>
    tpu.vector_store %arg7[%c0_59, %c0_60], %75 {strides = array<i32>} : memref<8x128xf32, #tpu.memory_space<vmem>>, vector<8x128xf32>,
    %c6_i32 = arith.constant 6 : i32
    %c8_i32_61 = arith.constant 8 : i32
    %77 = arith.muli %c6_i32, %c8_i32_61 : i32
    %78 = tpu.assume_multiple %77, 8 : i32
    %79 = arith.index_cast %78 : i32 to index
    %c0_62 = arith.constant 0 : index
    %80 = vector.load %arg6[%79, %c0_62] : memref<64x128xf32, #tpu.memory_space<vmem>>, vector<8x128xf32>
    %c0_63 = arith.constant 0 : index
    %c0_64 = arith.constant 0 : index
    %81 = vector.load %arg7[%c0_63, %c0_64] : memref<8x128xf32, #tpu.memory_space<vmem>>, vector<8x128xf32>
    %82 = arith.truncf %81 : vector<8x128xf32> to vector<8x128xbf16>
    %c0_65 = arith.constant 0 : index
    %c0_66 = arith.constant 0 : index
    %83 = vector.load %arg2[%c0_65, %c0_66] : memref<128x128xbf16, #tpu.memory_space<vmem>>, vector<128x128xbf16>
    %cst_67 = arith.constant dense<0.000000e+00> : vector<8x128xf32>
    %84 = tpu.matmul %82, %83, %cst_67 {dimension_numbers = #tpu.dot_dimension_numbers<[1], [0], [0], [1], [0, 0, 1, 1], [], []>} : vector<8x128xbf16>, vector<128x128xbf16>, vector<8x128xf32> -> vector<8x128xf32>
    %85 = arith.addf %80, %84 : vector<8x128xf32>
    %86 = math.tanh %85 : vector<8x128xf32>
    %c0_68 = arith.constant 0 : index
    %c0_69 = arith.constant 0 : index
    %87 = vector.load %arg7[%c0_68, %c0_69] : memref<8x128xf32, #tpu.memory_space<vmem>>, vector<8x128xf32>
    tpu.vector_store %arg7[%c0_68, %c0_69], %86 {strides = array<i32>} : memref<8x128xf32, #tpu.memory_space<vmem>>, vector<8x128xf32>,
    %c7_i32 = arith.constant 7 : i32
    %c8_i32_70 = arith.constant 8 : i32
    %88 = arith.muli %c7_i32, %c8_i32_70 : i32
    %89 = tpu.assume_multiple %88, 8 : i32
    %90 = arith.index_cast %89 : i32 to index
    %c0_71 = arith.constant 0 : index
    %91 = vector.load %arg6[%90, %c0_71] : memref<64x128xf32, #tpu.memory_space<vmem>>, vector<8x128xf32>
    %c0_72 = arith.constant 0 : index
    %c0_73 = arith.constant 0 : index
    %92 = vector.load %arg7[%c0_72, %c0_73] : memref<8x128xf32, #tpu.memory_space<vmem>>, vector<8x128xf32>
    %93 = arith.truncf %92 : vector<8x128xf32> to vector<8x128xbf16>
    %c0_74 = arith.constant 0 : index
    %c0_75 = arith.constant 0 : index
    %94 = vector.load %arg2[%c0_74, %c0_75] : memref<128x128xbf16, #tpu.memory_space<vmem>>, vector<128x128xbf16>
    %cst_76 = arith.constant dense<0.000000e+00> : vector<8x128xf32>
    %95 = tpu.matmul %93, %94, %cst_76 {dimension_numbers = #tpu.dot_dimension_numbers<[1], [0], [0], [1], [0, 0, 1, 1], [], []>} : vector<8x128xbf16>, vector<128x128xbf16>, vector<8x128xf32> -> vector<8x128xf32>
    %96 = arith.addf %91, %95 : vector<8x128xf32>
    %97 = math.tanh %96 : vector<8x128xf32>
    %c0_77 = arith.constant 0 : index
    %c0_78 = arith.constant 0 : index
    %98 = vector.load %arg7[%c0_77, %c0_78] : memref<8x128xf32, #tpu.memory_space<vmem>>, vector<8x128xf32>
    tpu.vector_store %arg7[%c0_77, %c0_78], %97 {strides = array<i32>} : memref<8x128xf32, #tpu.memory_space<vmem>>, vector<8x128xf32>,
    %c8_i32_79 = arith.constant 8 : i32
    %c0_80 = arith.constant 0 : index
    %c0_81 = arith.constant 0 : index
    %99 = vector.load %arg7[%c0_80, %c0_81] : memref<8x128xf32, #tpu.memory_space<vmem>>, vector<8x128xf32>
    %100 = arith.truncf %99 : vector<8x128xf32> to vector<8x128xbf16>
    %c0_82 = arith.constant 0 : index
    %c0_83 = arith.constant 0 : index
    %101 = vector.load %arg3[%c0_82, %c0_83] : memref<128x8xbf16, #tpu.memory_space<vmem>>, vector<128x8xbf16>
    %cst_84 = arith.constant dense<0.000000e+00> : vector<8x8xf32>
    %102 = tpu.matmul %100, %101, %cst_84 {dimension_numbers = #tpu.dot_dimension_numbers<[1], [0], [0], [1], [0, 0, 1, 1], [], []>} : vector<8x128xbf16>, vector<128x8xbf16>, vector<8x8xf32> -> vector<8x8xf32>
    %c0_85 = arith.constant 0 : index
    %c0_86 = arith.constant 0 : index
    %103 = vector.load %arg4[%c0_85, %c0_86] : memref<1x8xf32, #tpu.memory_space<vmem>>, vector<1x8xf32>
    %104 = vector.broadcast %103 : vector<1x8xf32> to vector<8x8xf32>
    %105 = arith.addf %102, %104 : vector<8x8xf32>
    %c0_87 = arith.constant 0 : index
    %c0_88 = arith.constant 0 : index
    %106 = vector.load %arg5[%c0_87, %c0_88] : memref<8x8xf32, #tpu.memory_space<vmem>>, vector<8x8xf32>
    tpu.vector_store %arg5[%c0_87, %c0_88], %105 {strides = array<i32>} : memref<8x8xf32, #tpu.memory_space<vmem>>, vector<8x8xf32>,
    return
  }
}

</mosaic_0001>

<bundles_post_ra>
// kernel: my_nlp_model_forward.1
= control target key start
LH: loop header
LB: loop body
LE: loop exit
PB: predicated region body
PF: predicated region fallthrough
CT: control target
= control target key end

     0   :  { %v1796_v2 = vmov 0   ;;  %v1797_v5 = vmov 0.0   ;;  %vm1798_vm0 = vmmov 0   ;;  %v1799_v42 = vmov 0.0|0.0   ;;  %s2243_s0 = inlined_call_operand.vmem [shape: s32[64,1], index: 0, kind: input, shape index: {}]   ;;  %s2244_s1 = inlined_call_operand.vmem [shape: f32[128,128], index: 1, kind: input, shape index: {}]   ;;  %s2245_s2 = inlined_call_operand.vmem [shape: bf16[128,128], index: 2, kind: input, shape index: {}]   ;;  %s2246_s3 = inlined_call_operand.vmem [shape: bf16[128,8], index: 3, kind: input, shape index: {}]   ;;  %s2247_s4 = inlined_call_operand.vmem [shape: f32[1,8], index: 4, kind: input, shape index: {}]   ;;  %s2248_s5 = inlined_call_operand.hbm [shape: f32[8,8], index: 5, kind: output, shape index: {}]  }
   0x1   :  { %v22_v0 = vld [vmem:[%s2243_s0] sm:$0xff]  ;;  %v24_v1 = vld [vmem:[%s2243_s0 + $0x10] sm:$0xff]  ;;  %1682 = vset.pattern.permute.xlu0 %v1796_v2  ;;  %1683 = vset.pattern.permute.xlu1 %v1796_v2  ;;  %v23_v3 = vld [vmem:[%s2243_s0 + $0x8] sm:$0xff] }
   0x2   :  { %33 = vperm.xlu0 %1682, %v22_v0   ;;  %39 = vperm.xlu1 %1683, %v24_v1   ;;  %v25_v4 = vld [vmem:[%s2243_s0 + $0x18] sm:$0xff]  ;;  %v1684_v6 = vld [vmem:[%s2245_s2] sm:$0xff]   ;;  %v81_v8 = vld [vmem:[%s2244_s1 + $0x8] sm:$0xff] }
   0x3   :  { %1464 = vmatprep.subr.bf16.mxu1 %v1797_v5  ;;  %v80_v7 = vld [vmem:[%s2244_s1] sm:$0xff]  ;;  %v1685_v10 = vld [vmem:[%s2245_s2 + $0x8] sm:$0xff]   ;;  %1480 = vmatprep.mubr.msk.bf16.mxu1 %vm1798_vm0, %v1797_v5  ;;  %v82_v12 = vld [vmem:[%s2244_s1 + $0x10] sm:$0xff] }
   0x4   :  { %v1644_v9 = vpack.c.bf16 %v81_v8, %v80_v7  ;;  %v26_v11 = vld [vmem:[%s2243_s0 + $0x20] sm:$0xff]  ;;  %1465 = vmatpush3.bf16.msra.mxu1 %v1684_v6  ;;  %v83_v13 = vld [vmem:[%s2244_s1 + $0x18] sm:$0xff]  ;;  %v27_v14 = vld [vmem:[%s2243_s0 + $0x28] sm:$0xff] }
   0x5   :  { %v1648_v15 = vpack.c.bf16 %v83_v13, %v82_v12  ;;  %v84_v16 = vld [vmem:[%s2244_s1 + $0x20] sm:$0xff]  ;;  %1466 = vmatprep.subr.bf16.mxu1 %v1797_v5  ;;  %v85_v17 = vld [vmem:[%s2244_s1 + $0x28] sm:$0xff]  ;;  %v1686_v18 = vld [vmem:[%s2245_s2 + $0x10] sm:$0xff]  }
   0x6   :  { %36 = vperm.xlu0 %1682, %v23_v3   ;;  %42 = vperm.xlu1 %1683, %v25_v4   ;;  %v1652_v19 = vpack.c.bf16 %v85_v17, %v84_v16  ;;  %v86_v20 = vld [vmem:[%s2244_s1 + $0x30] sm:$0xff]  ;;  %v87_v21 = vld [vmem:[%s2244_s1 + $0x38] sm:$0xff]  ;;  %v88_v25 = vld [vmem:[%s2244_s1 + $0x40] sm:$0xff] }
   0x7   :  { %1645 = vmatprep.subr.bf16.mxu0 %v1644_v9  ;;  %v28_v22 = vld [vmem:[%s2243_s0 + $0x30] sm:$0xff]  ;;  %v1687_v23 = vld [vmem:[%s2245_s2 + $0x18] sm:$0xff]   ;;  %v1656_v24 = vpack.c.bf16 %v87_v21, %v86_v20  ;;  %v89_v26 = vld [vmem:[%s2244_s1 + $0x48] sm:$0xff] }
   0x8   :  { %1647 = vmatpush3.bf16.msra.mxu0 %v1644_v9  ;;  %1467 = vmatpush3.bf16.msra.mxu1 %v1685_v10  ;;  %v1688_v27 = vld [vmem:[%s2245_s2 + $0x20] sm:$0xff]   ;;  %v29_v28 = vld [vmem:[%s2243_s0 + $0x38] sm:$0xff]  ;;  %v1660_v29 = vpack.c.bf16 %v89_v26, %v88_v25  ;;  %v90_v30 = vld [vmem:[%s2244_s1 + $0x50] sm:$0xff] }
   0x9   :  { %1649 = vmatprep.subr.bf16.mxu0 %v1648_v15  ;;  %1468 = vmatprep.subr.bf16.mxu1 %v1797_v5  ;;  %v91_v31 = vld [vmem:[%s2244_s1 + $0x58] sm:$0xff]  ;;  %v1689_v32 = vld [vmem:[%s2245_s2 + $0x28] sm:$0xff]   ;;  %v92_v33 = vld [vmem:[%s2244_s1 + $0x60] sm:$0xff] }
   0xa   :  { %45 = vperm.xlu0 %1682, %v26_v11   ;;  %48 = vperm.xlu1 %1683, %v27_v14   ;;  %v93_v34 = vld [vmem:[%s2244_s1 + $0x68] sm:$0xff]  ;;  %v1664_v35 = vpack.c.bf16 %v91_v31, %v90_v30  ;;  %v1690_v36 = vld [vmem:[%s2245_s2 + $0x30] sm:$0xff]   ;;  %v95_v38 = vld [vmem:[%s2244_s1 + $0x78] sm:$0xff] }
   0xb   :  { %v94_v37 = vld [vmem:[%s2244_s1 + $0x70] sm:$0xff]  ;;  %v1668_v39 = vpack.c.bf16 %v93_v34, %v92_v33  ;;  %v1691_v40 = vld [vmem:[%s2245_s2 + $0x38] sm:$0xff]  }
   0xc   :  { %1651 = vmatpush3.bf16.msra.mxu0 %v1648_v15  ;;  %1469 = vmatpush3.bf16.msra.mxu1 %v1686_v18  ;;  %v1672_v41 = vpack.c.bf16 %v95_v38, %v94_v37 }
   0xd   :  { %1653 = vmatprep.subr.bf16.mxu0 %v1652_v19  ;;  %1470 = vmatprep.subr.bf16.mxu1 %v1797_v5 }
   0xe   :  { %51 = vperm.xlu0 %1682, %v28_v22   ;;  %54 = vperm.xlu1 %1683, %v29_v28  }
  0x10   :  { %1655 = vmatpush3.bf16.msra.mxu0 %v1652_v19  ;;  %1471 = vmatpush3.bf16.msra.mxu1 %v1687_v23 }
  0x11   :  { %1657 = vmatprep.subr.bf16.mxu0 %v1656_v24  ;;  %1472 = vmatprep.subr.bf16.mxu1 %v1797_v5 }
  0x14   :  { %1659 = vmatpush3.bf16.msra.mxu0 %v1656_v24  ;;  %1473 = vmatpush3.bf16.msra.mxu1 %v1688_v27 }
  0x15   :  { %1661 = vmatprep.subr.bf16.mxu0 %v1660_v29  ;;  %1474 = vmatprep.subr.bf16.mxu1 %v1797_v5 }
  0x18   :  { %1663 = vmatpush3.bf16.msra.mxu0 %v1660_v29  ;;  %1475 = vmatpush3.bf16.msra.mxu1 %v1689_v32 }
  0x19   :  { %1665 = vmatprep.subr.bf16.mxu0 %v1664_v35  ;;  %1476 = vmatprep.subr.bf16.mxu1 %v1797_v5 }
  0x1c   :  { %1667 = vmatpush3.bf16.msra.mxu0 %v1664_v35  ;;  %1477 = vmatpush3.bf16.msra.mxu1 %v1690_v36 }
  0x1d   :  { %1669 = vmatprep.subr.bf16.mxu0 %v1668_v39  ;;  %1478 = vmatprep.subr.bf16.mxu1 %v1797_v5 }
  0x20   :  { %1671 = vmatpush3.bf16.msra.mxu0 %v1668_v39  ;;  %1479 = vmatpush3.bf16.msra.mxu1 %v1691_v40 }
  0x21   :  { %1673 = vmatprep.subr.bf16.mxu0 %v1672_v41  ;;  %1504 = vmatprep.subr.bf16.mxu1 %v1797_v5 }
  0x23   :  { %1481 = vmatmul.mubr.bf16.vlgmr.msra.gmra.mrb[0].mxu1 %v1799_v42 }
  0x24   :  { %1675 = vmatpush3.bf16.msra.mxu0 %v1672_v41  ;;  %1520 = vmatprep.mubr.msk.bf16.mxu1 %vm1798_vm0, %v1797_v5 }
  0x25   :  { %1484 = vmatprep.subr.bf16.mxu0 %v1797_v5 }
  0x26   :  { %10 = vsyncpa [#allocation5], 0  ;;  %v30_v43 = vlaneseq  ;;  %v1800_v47 = vmov 1.0   ;;  %v1692_v48 = vld [vmem:[%s2245_s2] sm:$0xff]   ;;  %v1693_v51 = vld [vmem:[%s2245_s2 + $0x8] sm:$0xff]   ;;  %s1801_s25 = smov [#allocation4]  }
  0x27   :  { %v1694_v54 = vld [vmem:[%s2245_s2 + $0x10] sm:$0xff]   ;;  %v1695_v56 = vld [vmem:[%s2245_s2 + $0x18] sm:$0xff]   ;;  %v1696_v58 = vld [vmem:[%s2245_s2 + $0x20] sm:$0xff]   ;;  %s1218_s26 = sshll.u32 %s1801_s25, 4  ;;  %vm1210_vm9 = vcmask 64512   ;;  %s1219_s26 = int_to_ptr.vmem [resolvable:$true] %s1218_s26 }
  0x28   :  { %v31_v44 = vand.u32 127, %v30_v43  ;;  %v1697_v59 = vld [vmem:[%s2245_s2 + $0x28] sm:$0xff]   ;;  %v1698_v60 = vld [vmem:[%s2245_s2 + $0x30] sm:$0xff]   ;;  %v1699_v61 = vld [vmem:[%s2245_s2 + $0x38] sm:$0xff]   ;;  %p1777_p1 = scmp.lt.s32.totalorder %s1219_s26, %s1219_s26 }
  0x29   :  { %v1700_v62 = vld [vmem:[%s2245_s2] sm:$0xff]   ;;  %v1701_v63 = vld [vmem:[%s2245_s2 + $0x8] sm:$0xff]   ;;  %v1702_v0 = vld [vmem:[%s2245_s2 + $0x10] sm:$0xff]  }
  0x2a   :  { %1505 = vmatpush3.bf16.msra.mxu1 %v1700_v62  ;;  %v1703_v1 = vld [vmem:[%s2245_s2 + $0x18] sm:$0xff]   ;;  %v1704_v18 = vld [vmem:[%s2245_s2 + $0x20] sm:$0xff]   ;;  %v1705_v19 = vld [vmem:[%s2245_s2 + $0x28] sm:$0xff]  }
  0x2b   :  { %1506 = vmatprep.subr.bf16.mxu1 %v1797_v5  ;;  %v1706_v20 = vld [vmem:[%s2245_s2 + $0x30] sm:$0xff]   ;;  %v1707_v21 = vld [vmem:[%s2245_s2 + $0x38] sm:$0xff]   ;;  %v1708_v22 = vld [vmem:[%s2245_s2] sm:$0xff]  }
  0x2c   :  { %v1709_v23 = vld [vmem:[%s2245_s2 + $0x8] sm:$0xff]   ;;  %v1710_v24 = vld [vmem:[%s2245_s2 + $0x10] sm:$0xff]   ;;  %v1711_v25 = vld [vmem:[%s2245_s2 + $0x18] sm:$0xff]  }
  0x2d   :  { %v1712_v33 = vld [vmem:[%s2245_s2 + $0x20] sm:$0xff]   ;;  %v1713_v34 = vld [vmem:[%s2245_s2 + $0x28] sm:$0xff]   ;;  %v1714_v35 = vld [vmem:[%s2245_s2 + $0x30] sm:$0xff]  }
  0x2e   :  { %1507 = vmatpush3.bf16.msra.mxu1 %v1701_v63  ;;  %v1715_v36 = vld [vmem:[%s2245_s2 + $0x38] sm:$0xff]   ;;  %v1716_v37 = vld [vmem:[%s2245_s2] sm:$0xff]   ;;  %v1717_v38 = vld [vmem:[%s2245_s2 + $0x8] sm:$0xff]  }
  0x2f   :  { %1508 = vmatprep.subr.bf16.mxu1 %v1797_v5  ;;  %v1718_v39 = vld [vmem:[%s2245_s2 + $0x10] sm:$0xff]   ;;  %v1719_v40 = vld [vmem:[%s2245_s2 + $0x18] sm:$0xff]   ;;  %v1728_v63 = vld [vmem:[%s2245_s2 + $0x20] sm:$0xff]  }
  0x32   :  { %1509 = vmatpush3.bf16.msra.mxu1 %v1702_v0  ;;  %v1729_v0 = vld [vmem:[%s2245_s2 + $0x28] sm:$0xff]  }
  0x33   :  { %1510 = vmatprep.subr.bf16.mxu1 %v1797_v5 }
  0x36   :  { %1511 = vmatpush3.bf16.msra.mxu1 %v1703_v1  ;;  %v1730_v1 = vld [vmem:[%s2245_s2 + $0x30] sm:$0xff]  }
  0x37   :  { %1512 = vmatprep.subr.bf16.mxu1 %v1797_v5 }
  0x3a   :  { %1513 = vmatpush3.bf16.msra.mxu1 %v1704_v18 }
  0x3b   :  { %1514 = vmatprep.subr.bf16.mxu1 %v1797_v5 }
  0x3e   :  { %1515 = vmatpush3.bf16.msra.mxu1 %v1705_v19  ;;  %v1736_v19 = vld [vmem:[%s2245_s2 + $0x20] sm:$0xff]  }
  0x3f   :  { %1516 = vmatprep.subr.bf16.mxu1 %v1797_v5 }
  0x42   :  { %1517 = vmatpush3.bf16.msra.mxu1 %v1706_v20  ;;  %v1738_v20 = vld [vmem:[%s2245_s2 + $0x30] sm:$0xff]  }
  0x43   :  { %1518 = vmatprep.subr.bf16.mxu1 %v1797_v5 }
  0x46   :  { %1519 = vmatpush3.bf16.msra.mxu1 %v1707_v21  ;;  %v1739_v21 = vld [vmem:[%s2245_s2 + $0x38] sm:$0xff]  }
  0x47   :  { %1544 = vmatprep.subr.bf16.mxu1 %v1797_v5 }
  0x81   :  { %v34_v45 = vpop.permute.xlu0 %33  ;;  %v40_v46 = vpop.permute.xlu1 %39 }
  0x82   :  { %vm56_vm1 = vcmp.eq.s32.totalorder %v31_v44, %v34_v45  ;;  %vm58_vm2 = vcmp.eq.s32.totalorder %v31_v44, %v40_v46 }
  0x83   :  { %1452 = vmatprep.mubr.msk.f32.mxu0 %vm56_vm1, %v1800_v47 }
  0x85   :  { %v37_v49 = vpop.permute.xlu0 %36  ;;  %v43_v50 = vpop.permute.xlu1 %42 }
  0x86   :  { %vm57_vm3 = vcmp.eq.s32.totalorder %v31_v44, %v37_v49  ;;  %vm59_vm4 = vcmp.eq.s32.totalorder %v31_v44, %v43_v50  ;;  %v1721_v49 = vld [vmem:[%s2245_s2 + $0x28] sm:$0xff]   ;;  %v1722_v50 = vld [vmem:[%s2245_s2 + $0x30] sm:$0xff]  }
  0x87   :  { %1453 = vmatmul.mubr.msk.f32.vlgmr.msra.gmra.mrb[0].mxu0 %vm57_vm3, %v1800_v47 }
  0x88   :  { %1455 = vmatprep.mubr.msk.f32.mxu0 %vm58_vm2, %v1800_v47  ;;  %1485 = vmatpush3.bf16.msra.mxu0 %v1692_v48  ;;  %v1720_v48 = vld [vmem:[%s2245_s2 + $0x20] sm:$0xff]  }
  0x89   :  { %v46_v52 = vpop.permute.xlu0 %45  ;;  %v49_v53 = vpop.permute.xlu1 %48  ;;  %1486 = vmatprep.subr.bf16.mxu0 %v1797_v5 }
  0x8a   :  { %vm60_vm5 = vcmp.eq.s32.totalorder %v31_v44, %v46_v52  ;;  %vm61_vm6 = vcmp.eq.s32.totalorder %v31_v44, %v49_v53  ;;  %v1724_v52 = vld [vmem:[%s2245_s2] sm:$0xff]   ;;  %v1725_v53 = vld [vmem:[%s2245_s2 + $0x8] sm:$0xff]  }
  0x8b   :  { %1456 = vmatmul.mubr.msk.f32.gmra.mrb[2].mxu0 %vm59_vm4, %v1800_v47 }
  0x8c   :  { %1458 = vmatprep.mubr.msk.f32.mxu0 %vm60_vm5, %v1800_v47  ;;  %1487 = vmatpush3.bf16.msra.mxu0 %v1693_v51  ;;  %v1723_v51 = vld [vmem:[%s2245_s2 + $0x38] sm:$0xff]  }
  0x8d   :  { %v52_v55 = vpop.permute.xlu0 %51  ;;  %1488 = vmatprep.subr.bf16.mxu0 %v1797_v5  ;;  %v55_v57 = vpop.permute.xlu1 %54 }
  0x8e   :  { %vm62_vm7 = vcmp.eq.s32.totalorder %v31_v44, %v52_v55  ;;  %vm63_vm8 = vcmp.eq.s32.totalorder %v31_v44, %v55_v57  ;;  %v1727_v55 = vld [vmem:[%s2245_s2 + $0x18] sm:$0xff]  }
  0x8f   :  { %1459 = vmatmul.mubr.msk.f32.gmra.mrb[4].mxu0 %vm61_vm6, %v1800_v47 }
  0x90   :  { %1461 = vmatprep.mubr.msk.f32.mxu0 %vm62_vm7, %v1800_v47  ;;  %1489 = vmatpush3.bf16.msra.mxu0 %v1694_v54  ;;  %v1726_v54 = vld [vmem:[%s2245_s2 + $0x10] sm:$0xff]  }
  0x91   :  { %1490 = vmatprep.subr.bf16.mxu0 %v1797_v5 }
  0x93   :  { %1462 = vmatmul.mubr.msk.f32.gmra.mrb[6].mxu0 %vm63_vm8, %v1800_v47 }
  0x94   :  { %1491 = vmatpush3.bf16.msra.mxu0 %v1695_v56  ;;  %1500 = vmatprep.mubr.msk.bf16.mxu0 %vm1798_vm0, %v1797_v5 }
  0x95   :  { %1492 = vmatprep.subr.bf16.mxu0 %v1797_v5 }
  0x98   :  { %1493 = vmatpush3.bf16.msra.mxu0 %v1696_v58 }
  0x99   :  { %1494 = vmatprep.subr.bf16.mxu0 %v1797_v5 }
  0x9c   :  { %1495 = vmatpush3.bf16.msra.mxu0 %v1697_v59 }
  0x9d   :  { %1496 = vmatprep.subr.bf16.mxu0 %v1797_v5 }
  0xa0   :  { %1497 = vmatpush3.bf16.msra.mxu0 %v1698_v60 }
  0xa1   :  { %1498 = vmatprep.subr.bf16.mxu0 %v1797_v5 }
  0xa4   :  { %1499 = vmatpush3.bf16.msra.mxu0 %v1699_v61 }
  0xa5   :  { %1524 = vmatprep.subr.bf16.mxu0 %v1797_v5 }
  0xf6   :  { %v311_v2 = vpop.f32.mrb[0].mxu1 }
  0xf7   :  { %v1482_v3 = vpop.f32.mrb[1].mxu1 }
  0xf8   :  { %v314_v4 = vpop.f32.mrb[2].mxu1  ;;  %v1732_v3 = vld [vmem:[%s2245_s2] sm:$0xff]  }
  0xf9   :  { %v1483_v6 = vpop.f32.mrb[3].mxu1  ;;  %v1733_v4 = vld [vmem:[%s2245_s2 + $0x8] sm:$0xff]  }
  0xfa   :  { %v1734_v6 = vld [vmem:[%s2245_s2 + $0x10] sm:$0xff]  }
 0x15a   :  { %v1454_v7 = vpop.f32.mrb[0].mxu0 }
 0x15b   :  { %v162_v8 = vpop.f32.mrb[1].mxu0 }
 0x15c   :  { %v317_v9 = vadd.f32 %v311_v2, %v162_v8  ;;  %v1731_v2 = vld [vmem:[%s2245_s2 + $0x38] sm:$0xff]  }
 0x15e   :  { %1756 = vtanh.f32 %v317_v9  ;;  %v1992_v10 = vpop.f32.mrb[2].mxu0 }
 0x15f   :  { %v1994_v11 = vpop.f32.mrb[3].mxu0 }
 0x162   :  { %v1996_v12 = vpop.f32.mrb[4].mxu0 }
 0x163   :  { %v1998_v13 = vpop.f32.mrb[5].mxu0 }
 0x166   :  { %v2000_v14 = vpop.f32.mrb[6].mxu0 }
 0x167   :  { %v2002_v15 = vpop.f32.mrb[7].mxu0 }
 0x168   :  { %v1757_v16 = vpop.eup %1756 }
 0x169   :  { %v323_v17 = vpack.c.bf16 %v1757_v16, %v1757_v16 }
 0x16b   :  { %1501 = vmatmul.mubr.bf16.vlgmr.msra.gmra.mrb[8].mxu0 %v323_v17 }
 0x16c   :  { %1540 = vmatprep.mubr.msk.bf16.mxu0 %vm1798_vm0, %v1797_v5  ;;  %1525 = vmatpush3.bf16.msra.mxu0 %v1708_v22  ;;  %v1740_v22 = vld [vmem:[%s2245_s2] sm:$0xff]  }
 0x16d   :  { %1526 = vmatprep.subr.bf16.mxu0 %v1797_v5 }
 0x170   :  { %1527 = vmatpush3.bf16.msra.mxu0 %v1709_v23  ;;  %v1741_v23 = vld [vmem:[%s2245_s2 + $0x8] sm:$0xff]  }
 0x171   :  { %1528 = vmatprep.subr.bf16.mxu0 %v1797_v5 }
 0x174   :  { %1529 = vmatpush3.bf16.msra.mxu0 %v1710_v24  ;;  %v1742_v24 = vld [vmem:[%s2245_s2 + $0x10] sm:$0xff]  }
 0x175   :  { %1530 = vmatprep.subr.bf16.mxu0 %v1797_v5 }
 0x178   :  { %1531 = vmatpush3.bf16.msra.mxu0 %v1711_v25  ;;  %v1743_v25 = vld [vmem:[%s2245_s2 + $0x18] sm:$0xff]  }
 0x179   :  { %1532 = vmatprep.subr.bf16.mxu0 %v1797_v5 }
 0x17c   :  { %1533 = vmatpush3.bf16.msra.mxu0 %v1712_v33  ;;  %v1744_v33 = vld [vmem:[%s2245_s2 + $0x20] sm:$0xff]  }
 0x17d   :  { %1534 = vmatprep.subr.bf16.mxu0 %v1797_v5 }
 0x180   :  { %1535 = vmatpush3.bf16.msra.mxu0 %v1713_v34  ;;  %v1746_v34 = vld [vmem:[%s2245_s2 + $0x30] sm:$0xff]  }
 0x181   :  { %1536 = vmatprep.subr.bf16.mxu0 %v1797_v5 }
 0x184   :  { %1537 = vmatpush3.bf16.msra.mxu0 %v1714_v35  ;;  %v1747_v35 = vld [vmem:[%s2245_s2 + $0x38] sm:$0xff]  }
 0x185   :  { %1538 = vmatprep.subr.bf16.mxu0 %v1797_v5 }
 0x188   :  { %1539 = vmatpush3.bf16.msra.mxu0 %v1715_v36  ;;  %v1748_v36 = vld [vmem:[%s2246_s3] sm:$0xff]  }
 0x189   :  { %1564 = vmatprep.subr.bf16.mxu0 %v1797_v5 }
 0x23e   :  { %v422_v26 = vpop.f32.mrb[8].mxu0 }
 0x23f   :  { %v428_v27 = vadd.f32 %v1454_v7, %v422_v26  ;;  %v1502_v28 = vpop.f32.mrb[9].mxu0  ;;  %v1735_v7 = vld [vmem:[%s2245_s2 + $0x18] sm:$0xff]  }
 0x240   :  { %v425_v29 = vpop.f32.mrb[10].mxu0 }
 0x241   :  { %1758 = vtanh.f32 %v428_v27  ;;  %v1503_v30 = vpop.f32.mrb[11].mxu0 }
 0x24b   :  { %v1759_v31 = vpop.eup %1758 }
 0x24c   :  { %v434_v32 = vpack.c.bf16 %v1759_v31, %v1759_v31 }
 0x24e   :  { %1521 = vmatmul.mubr.bf16.vlgmr.msra.gmra.mrb[4].mxu1 %v434_v32 }
 0x24f   :  { %1560 = vmatprep.mubr.msk.bf16.mxu1 %vm1798_vm0, %v1797_v5  ;;  %1545 = vmatpush3.bf16.msra.mxu1 %v1716_v37  ;;  %v1749_v37 = vld [vmem:[%s2246_s3 + $0x8] sm:$0xff]  }
 0x250   :  { %1546 = vmatprep.subr.bf16.mxu1 %v1797_v5 }
 0x253   :  { %1547 = vmatpush3.bf16.msra.mxu1 %v1717_v38  ;;  %v1750_v38 = vld [vmem:[%s2246_s3 + $0x10] sm:$0xff]  }
 0x254   :  { %1548 = vmatprep.subr.bf16.mxu1 %v1797_v5 }
 0x257   :  { %1549 = vmatpush3.bf16.msra.mxu1 %v1718_v39  ;;  %v1751_v39 = vld [vmem:[%s2246_s3 + $0x18] sm:$0xff]  }
 0x258   :  { %1550 = vmatprep.subr.bf16.mxu1 %v1797_v5 }
 0x25b   :  { %1551 = vmatpush3.bf16.msra.mxu1 %v1719_v40 }
 0x25c   :  { %1552 = vmatprep.subr.bf16.mxu1 %v1797_v5 }
 0x25f   :  { %1553 = vmatpush3.bf16.msra.mxu1 %v1720_v48  ;;  %v1753_v48 = vld [vmem:[%s2246_s3 + $0x28] sm:$0xff]  }
 0x260   :  { %1554 = vmatprep.subr.bf16.mxu1 %v1797_v5 }
 0x263   :  { %1555 = vmatpush3.bf16.msra.mxu1 %v1721_v49  ;;  %v1755_v49 = vld [vmem:[%s2246_s3 + $0x38] sm:$0xff]  }
 0x264   :  { %1556 = vmatprep.subr.bf16.mxu1 %v1797_v5 }
 0x267   :  { %1557 = vmatpush3.bf16.msra.mxu1 %v1722_v50 }
 0x268   :  { %1558 = vmatprep.subr.bf16.mxu1 %v1797_v5 }
 0x26b   :  { %1559 = vmatpush3.bf16.msra.mxu1 %v1723_v51 }
 0x26c   :  { %1584 = vmatprep.subr.bf16.mxu1 %v1797_v5 }
 0x321   :  { %v533_v41 = vpop.f32.mrb[4].mxu1 }
 0x322   :  { %v539_v42 = vadd.f32 %v533_v41, %v1994_v11  ;;  %v1522_v43 = vpop.f32.mrb[5].mxu1 }
 0x323   :  { %v536_v44 = vpop.f32.mrb[6].mxu1 }
 0x324   :  { %1760 = vtanh.f32 %v539_v42  ;;  %v1523_v45 = vpop.f32.mrb[7].mxu1 }
 0x32e   :  { %v1761_v46 = vpop.eup %1760 }
 0x32f   :  { %v545_v47 = vpack.c.bf16 %v1761_v46, %v1761_v46 }
 0x331   :  { %1541 = vmatmul.mubr.bf16.vlgmr.msra.gmra.mrb[12].mxu0 %v545_v47  ;;  %v1752_v47 = vld [vmem:[%s2246_s3 + $0x20] sm:$0xff]  }
 0x332   :  { %1580 = vmatprep.mubr.msk.bf16.mxu0 %vm1798_vm0, %v1797_v5  ;;  %1565 = vmatpush3.bf16.msra.mxu0 %v1724_v52 }
 0x333   :  { %1566 = vmatprep.subr.bf16.mxu0 %v1797_v5 }
 0x336   :  { %1567 = vmatpush3.bf16.msra.mxu0 %v1725_v53 }
 0x337   :  { %1568 = vmatprep.subr.bf16.mxu0 %v1797_v5 }
 0x33a   :  { %1569 = vmatpush3.bf16.msra.mxu0 %v1726_v54 }
 0x33b   :  { %1570 = vmatprep.subr.bf16.mxu0 %v1797_v5 }
 0x33e   :  { %1571 = vmatpush3.bf16.msra.mxu0 %v1727_v55 }
 0x33f   :  { %1572 = vmatprep.subr.bf16.mxu0 %v1797_v5 }
 0x342   :  { %1573 = vmatpush3.bf16.msra.mxu0 %v1728_v63 }
 0x343   :  { %1574 = vmatprep.subr.bf16.mxu0 %v1797_v5 }
 0x346   :  { %1575 = vmatpush3.bf16.msra.mxu0 %v1729_v0 }
 0x347   :  { %1576 = vmatprep.subr.bf16.mxu0 %v1797_v5 }
 0x34a   :  { %1577 = vmatpush3.bf16.msra.mxu0 %v1730_v1 }
 0x34b   :  { %1578 = vmatprep.subr.bf16.mxu0 %v1797_v5 }
 0x34e   :  { %1579 = vmatpush3.bf16.msra.mxu0 %v1731_v2 }
 0x34f   :  { %1604 = vmatprep.subr.bf16.mxu0 %v1797_v5 }
 0x404   :  { %v644_v56 = vpop.f32.mrb[12].mxu0 }
 0x405   :  { %v650_v57 = vadd.f32 %v1992_v10, %v644_v56  ;;  %v1542_v58 = vpop.f32.mrb[13].mxu0 }
 0x406   :  { %v647_v59 = vpop.f32.mrb[14].mxu0 }
 0x407   :  { %1762 = vtanh.f32 %v650_v57  ;;  %v1543_v60 = vpop.f32.mrb[15].mxu0  ;;  %v1306_v57 = vld [vmem:[%s2247_s4] ss:$0 sm:$0xff] }
 0x411   :  { %v1763_v61 = vpop.eup %1762 }
 0x412   :  { %v656_v62 = vpack.c.bf16 %v1763_v61, %v1763_v61 }
 0x414   :  { %1561 = vmatmul.mubr.bf16.vlgmr.msra.gmra.mrb[8].mxu1 %v656_v62 }
 0x415   :  { %1600 = vmatprep.mubr.msk.bf16.mxu1 %vm1798_vm0, %v1797_v5  ;;  %1585 = vmatpush3.bf16.msra.mxu1 %v1732_v3 }
 0x416   :  { %1586 = vmatprep.subr.bf16.mxu1 %v1797_v5 }
 0x419   :  { %1587 = vmatpush3.bf16.msra.mxu1 %v1733_v4 }
 0x41a   :  { %1588 = vmatprep.subr.bf16.mxu1 %v1797_v5 }
 0x41d   :  { %1589 = vmatpush3.bf16.msra.mxu1 %v1734_v6 }
 0x41e   :  { %1590 = vmatprep.subr.bf16.mxu1 %v1797_v5 }
 0x421   :  { %1591 = vmatpush3.bf16.msra.mxu1 %v1735_v7 }
 0x422   :  { %1592 = vmatprep.subr.bf16.mxu1 %v1797_v5 }
 0x425   :  { %1593 = vmatpush3.bf16.msra.mxu1 %v1736_v19 }
 0x426   :  { %1594 = vmatprep.subr.bf16.mxu1 %v1797_v5 }
 0x4e7   :  { %v755_v8 = vpop.f32.mrb[8].mxu1 }
 0x4e8   :  { %v761_v9 = vadd.f32 %v755_v8, %v1998_v13  ;;  %v1562_v10 = vpop.f32.mrb[9].mxu1  ;;  %v1737_v13 = vld [vmem:[%s2245_s2 + $0x28] sm:$0xff]  }
 0x4e9   :  { %v758_v11 = vpop.f32.mrb[10].mxu1  ;;  %1595 = vmatpush3.bf16.msra.mxu1 %v1737_v13 }
 0x4ea   :  { %1764 = vtanh.f32 %v761_v9  ;;  %v1563_v16 = vpop.f32.mrb[11].mxu1  ;;  %1596 = vmatprep.subr.bf16.mxu1 %v1797_v5 }
 0x4ed   :  { %1597 = vmatpush3.bf16.msra.mxu1 %v1738_v20 }
 0x4ee   :  { %1598 = vmatprep.subr.bf16.mxu1 %v1797_v5 }
 0x4f1   :  { %1599 = vmatpush3.bf16.msra.mxu1 %v1739_v21 }
 0x4f2   :  { %1624 = vmatprep.subr.bf16.mxu1 %v1797_v5 }
 0x4f4   :  { %v1765_v17 = vpop.eup %1764 }
 0x4f5   :  { %v767_v18 = vpack.c.bf16 %v1765_v17, %v1765_v17 }
 0x4f7   :  { %1581 = vmatmul.mubr.bf16.vlgmr.msra.gmra.mrb[16].mxu0 %v767_v18 }
 0x4f8   :  { %1620 = vmatprep.mubr.msk.bf16.mxu0 %vm1798_vm0, %v1797_v5  ;;  %1605 = vmatpush3.bf16.msra.mxu0 %v1740_v22 }
 0x4f9   :  { %1606 = vmatprep.subr.bf16.mxu0 %v1797_v5 }
 0x4fc   :  { %1607 = vmatpush3.bf16.msra.mxu0 %v1741_v23 }
 0x4fd   :  { %1608 = vmatprep.subr.bf16.mxu0 %v1797_v5 }
 0x500   :  { %1609 = vmatpush3.bf16.msra.mxu0 %v1742_v24 }
 0x501   :  { %1610 = vmatprep.subr.bf16.mxu0 %v1797_v5 }
 0x504   :  { %1611 = vmatpush3.bf16.msra.mxu0 %v1743_v25 }
 0x505   :  { %1612 = vmatprep.subr.bf16.mxu0 %v1797_v5 }
 0x508   :  { %1613 = vmatpush3.bf16.msra.mxu0 %v1744_v33 }
 0x509   :  { %1614 = vmatprep.subr.bf16.mxu0 %v1797_v5 }
 0x5ca   :  { %v866_v26 = vpop.f32.mrb[16].mxu0 }
 0x5cb   :  { %v872_v27 = vadd.f32 %v1996_v12, %v866_v26  ;;  %v1582_v28 = vpop.f32.mrb[17].mxu0  ;;  %v1745_v12 = vld [vmem:[%s2245_s2 + $0x28] sm:$0xff]  }
 0x5cc   :  { %v869_v29 = vpop.f32.mrb[18].mxu0  ;;  %1615 = vmatpush3.bf16.msra.mxu0 %v1745_v12 }
 0x5cd   :  { %1766 = vtanh.f32 %v872_v27  ;;  %v1583_v30 = vpop.f32.mrb[19].mxu0  ;;  %1616 = vmatprep.subr.bf16.mxu0 %v1797_v5 }
 0x5d0   :  { %1617 = vmatpush3.bf16.msra.mxu0 %v1746_v34 }
 0x5d1   :  { %1618 = vmatprep.subr.bf16.mxu0 %v1797_v5 }
 0x5d4   :  { %1619 = vmatpush3.bf16.msra.mxu0 %v1747_v35 }
 0x5d7   :  { %v1767_v31 = vpop.eup %1766 }
 0x5d8   :  { %v878_v32 = vpack.c.bf16 %v1767_v31, %v1767_v31 }
 0x5da   :  { %1601 = vmatmul.mubr.bf16.vlgmr.msra.gmra.mrb[12].mxu1 %v878_v32 }
 0x5db   :  { %1640 = vmatprep.mubr.msk.bf16.mxu1 %vm1798_vm0, %v1797_v5  ;;  %1625 = vmatpush3.bf16.msra.mxu1 %v1748_v36 }
 0x5dc   :  { %1626 = vmatprep.subr.bf16.mxu1 %v1797_v5 }
 0x5df   :  { %1627 = vmatpush3.bf16.msra.mxu1 %v1749_v37 }
 0x5e0   :  { %1628 = vmatprep.subr.bf16.mxu1 %v1797_v5 }
 0x5e3   :  { %1629 = vmatpush3.bf16.msra.mxu1 %v1750_v38 }
 0x5e4   :  { %1630 = vmatprep.subr.bf16.mxu1 %v1797_v5 }
 0x5e7   :  { %1631 = vmatpush3.bf16.msra.mxu1 %v1751_v39 }
 0x5e8   :  { %1632 = vmatprep.subr.bf16.mxu1 %v1797_v5 }
 0x5eb   :  { %1633 = vmatpush3.bf16.msra.mxu1 %v1752_v47 }
 0x5ec   :  { %1634 = vmatprep.subr.bf16.mxu1 %v1797_v5 }
 0x5ef   :  { %1635 = vmatpush3.bf16.msra.mxu1 %v1753_v48 }
 0x5f0   :  { %1636 = vmatprep.subr.bf16.mxu1 %v1797_v5 }
 0x6ad   :  { %v977_v40 = vpop.f32.mrb[12].mxu1 }
 0x6ae   :  { %v983_v41 = vadd.f32 %v977_v40, %v2002_v15  ;;  %v1602_v42 = vpop.f32.mrb[13].mxu1  ;;  %v1754_v15 = vld [vmem:[%s2246_s3 + $0x30] sm:$0xff]   ;;  %s1772_s3 = scalar_lea.vmem %s1219_s26, 128 }
 0x6af   :  { %v980_v43 = vpop.f32.mrb[14].mxu1  ;;  %1637 = vmatpush3.bf16.msra.mxu1 %v1754_v15  ;;  %p1773_p0 = scmp.ne.s32.totalorder %s1219_s26, %s1772_s3  ;;  %p1778_p2 = scmp.lt.s32.totalorder %s1772_s3, %s1772_s3 }
 0x6b0   :  { %1768 = vtanh.f32 %v983_v41  ;;  %v1603_v44 = vpop.f32.mrb[15].mxu1  ;;  %1638 = vmatprep.subr.bf16.mxu1 %v1797_v5 }
 0x6b1   :  { %p1779_p3 = por %p1778_p2, %p1777_p1 }
 0x6b3   :  { %1639 = vmatpush3.bf16.msra.mxu1 %v1755_v49  ;;  %p1780_p4 = pnand %p1779_p3, %p1773_p0 }
 0x6ba   :  { %v1769_v45 = vpop.eup %1768 }
 0x6bb   :  { %v989_v46 = vpack.c.bf16 %v1769_v45, %v1769_v45 }
 0x6bd   :  { %1621 = vmatmul.mubr.bf16.vlgmr.msra.gmra.mrb[20].mxu0 %v989_v46 }
 0x790   :  { %v1088_v50 = vpop.f32.mrb[20].mxu0 }
 0x791   :  { %v1094_v51 = vadd.f32 %v2000_v14, %v1088_v50  ;;  %v1622_v52 = vpop.f32.mrb[21].mxu0 }
 0x792   :  { %v1091_v53 = vpop.f32.mrb[22].mxu0 }
 0x793   :  { %1770 = vtanh.f32 %v1094_v51  ;;  %v1623_v54 = vpop.f32.mrb[23].mxu0 }
 0x79d   :  { %v1771_v55 = vpop.eup %1770 }
 0x79e   :  { %v1098_v56 = vpack.c.bf16 %v1771_v55, %v1771_v55 }
 0x7a0   :  { %1641 = vmatmul.mubr.bf16.vlgmr.msra.gmra.mrb[16].mxu1 %v1098_v56 }
 0x873   :  { %v1204_v5 = vpop.f32.mrb[16].mxu1 }
 0x874   :  { %v1205_v58 = vadd.f32 %v1306_v57, %v1204_v5  ;;  %v1642_v59 = vpop.f32.mrb[17].mxu1 }
 0x875   :  { %v1207_v60 = vpop.f32.mrb[18].mxu1 }
 0x876   :  { %v1643_v14 = vpop.f32.mrb[19].mxu1  ;;  %1211 = vst.msk [vmem:[#allocation4] sm:$0xff] %vm1210_vm9, %v1205_v58 }
 0x877   :  { %1783 = shalt.err (!%p1780_p4)
}
 0x878   :  { %s1784_s4 = scalar_lea.hbm %s2248_s5, 128 }
 0x879   :  { %p1785_p5 = scmp.ne.s32.totalorder %s2248_s5, %s1784_s4  ;;  %p1788_p6 = scmp.lt.u32.totalorder %s1784_s4, %s2248_s5 }
 0x87b   :  { %p1790_p7 = pnand %p1788_p6, %p1785_p5 }
 0x87d   :  { %1793 = shalt.err (!%p1790_p7)
}
 0x87e   :  { %1221 = dma.vmem_to_hbm [thread:$0]  %s1219_s26, 128, %s2248_s5, [#allocation5]  }
 0x87f   :  { %1794 = dma.done.wait [#allocation5], 128  }
 0x880   :  { %1795 = vsyncadd [#allocation5], 4294967168 }
 0x881   :  { %1225 = vsyncpa [#allocation5], 1 }

</bundles_post_ra>
